<compile_context>
chip_gen: v7x
topology: tpu7x:2x2x1
jax: 0.10.0
libtpu: 0.0.40
codegen_flags: <defaults>
</compile_context>

<pallas_src>
import functools

import jax
import jax.numpy as jnp
from jax.experimental import pallas as pl
from jax.experimental.pallas import tpu as pltpu


def _round_up(v, m):
    return ((v + m - 1) // m) * m


def _mlp_kernel(x_ref, w1_ref, b1_ref, w2_ref, b2_ref, w3_ref, b3_ref, out_ref, *, alpha):
    """Fused MLP forward for one row-tile.

    x:  (tm, nfeat)            bf16
    w1: (nfeat, outfeat) bf16  b1: (1, outfeat) f32
    w2: (outfeat, outd_1) bf16 b2: (1, outd_1) f32
    w3: (outd_1, nclass_pad) bf16  b3: (1, nclass_pad) f32 (padded cols = -1e30)
    out:(tm, nclass_pad) f32 = log_softmax(..., dim=1)
    """
    # Layer 1: bf16 MXU operands, f32 accumulation / bias / activation.
    h = jnp.dot(x_ref[...], w1_ref[...], preferred_element_type=jnp.float32) + b1_ref[...]
    h = jnp.maximum(h, alpha * h)                       # LeakyReLU (0 < alpha < 1)
    # F.dropout(training=False) -> identity

    h = jnp.dot(h.astype(jnp.bfloat16), w2_ref[...],
                preferred_element_type=jnp.float32) + b2_ref[...]
    h = jnp.maximum(h, alpha * h)                       # LeakyReLU
    # F.dropout(training=False) -> identity

    logits = jnp.dot(h.astype(jnp.bfloat16), w3_ref[...],
                     preferred_element_type=jnp.float32) + b3_ref[...]

    # log_softmax along dim=1 (per row, entirely inside this row-tile).
    # Padded class columns carry bias -1e30 -> exp() == 0, so max/sum are
    # identical to the unpadded computation.
    m = jnp.max(logits, axis=1, keepdims=True)
    shifted = logits - m
    lse = jnp.log(jnp.sum(jnp.exp(shifted), axis=1, keepdims=True))
    out_ref[...] = shifted - lse


def mlp_forward(x, adj, params, *, alpha=0.2, edge_index=None, block_rows=1024):
    """Fused forward pass of MLP.  `adj`/`edge_index` are unused (API parity)."""
    del adj, edge_index  # reference MLP.forward ignores them
    N, nfeat = x.shape
    w1, b1 = params["w1"], params["b1"]
    w2, b2 = params["w2"], params["b2"]
    w3, b3 = params["w3"], params["b3"]
    outfeat = w1.shape[1]
    outd_1 = w2.shape[1]
    nclass = w3.shape[1]

    # ---- lane-dense output: pad class dim to a multiple of 128 -------------
    nclass_pad = _round_up(nclass, 128)
    if nclass_pad != nclass:
        w3 = jnp.pad(w3, ((0, 0), (0, nclass_pad - nclass)))
        b3 = jnp.pad(b3, ((0, 0), (0, nclass_pad - nclass)), constant_values=-1e30)

    # ---- bf16 MXU operands (accumulation stays f32 inside the kernel) ------
    x_bf = x.astype(jnp.bfloat16)
    w1_bf = w1.astype(jnp.bfloat16)
    w2_bf = w2.astype(jnp.bfloat16)
    w3_bf = w3.astype(jnp.bfloat16)
    b1_f = b1.astype(jnp.float32)
    b2_f = b2.astype(jnp.float32)
    b3_f = b3.astype(jnp.float32)

    # ---- VMEM-aware row-tile choice -----------------------------------------
    weight_bytes = ((nfeat * outfeat + outfeat * outd_1 + outd_1 * nclass_pad) * 2
                    + (outfeat + outd_1 + nclass_pad) * 4)        # single-buffered
    # per-row: x tile (bf16, 2 buffers) + out tile (f32, 2 buffers)
    #          + live f32 intermediates (x2 margin)
    bytes_per_row = (nfeat * 2 * 2 + nclass_pad * 4 * 2
                     + (outfeat + outd_1 + nclass_pad) * 4 * 2)
    budget = 24 * 1024 * 1024  # conservative working set: fits v5e/v6e/v7x defaults
    tm_vmem = max(8, ((budget - weight_bytes) // max(bytes_per_row, 1)) // 8 * 8)

    if N <= 8:
        tm = N  # single full-array block (block dim == array dim is always legal)
    else:
        # At least two row tiles so v7x's two TensorCores both get work.
        tm = min(block_rows, tm_vmem, _round_up(pl.cdiv(N, 2), 8))
        tm = max(8, (tm // 8) * 8)
    grid = (pl.cdiv(N, tm),)

    # ---- specs ---------------------------------------------------------------
    def _resident_spec(shape):
        # Same block every grid step -> resident; single-buffer it.
        try:
            return pl.BlockSpec(shape, lambda i: (0, 0), pipeline_mode=pl.Buffered(1))
        except TypeError:  # older API without pipeline_mode: fall back to default
            return pl.BlockSpec(shape, lambda i: (0, 0))

    footprint = (weight_bytes
                 + 2 * tm * nfeat * 2              # x tile, double buffered
                 + 2 * tm * nclass_pad * 4         # out tile, double buffered
                 + 2 * tm * (outfeat + outd_1 + nclass_pad) * 4)  # live intermediates
    vmem_limit = int(min(max(2 * footprint, 8 * 1024 * 1024), 64 * 1024 * 1024))

    cost = pl.CostEstimate(
        flops=2 * N * (nfeat * outfeat + outfeat * outd_1 + outd_1 * nclass_pad),
        transcendentals=N * (nclass_pad + 1),
        bytes_accessed=(N * nfeat * 2 + weight_bytes + N * nclass_pad * 4),
    )

    out_pad = pl.pallas_call(
        functools.partial(_mlp_kernel, alpha=alpha),
        out_shape=jax.ShapeDtypeStruct((N, nclass_pad), jnp.float32),
        grid=grid,
        in_specs=[
            pl.BlockSpec((tm, nfeat), lambda i: (i, 0)),
            _resident_spec(w1_bf.shape), _resident_spec(b1_f.shape),
            _resident_spec(w2_bf.shape), _resident_spec(b2_f.shape),
            _resident_spec(w3_bf.shape), _resident_spec(b3_f.shape),
        ],
        out_specs=pl.BlockSpec((tm, nclass_pad), lambda i: (i, 0)),
        compiler_params=pltpu.CompilerParams(
            dimension_semantics=("parallel",),   # row tiles independent -> v7x 2 TCs
            vmem_limit_bytes=vmem_limit,
        ),
        cost_estimate=cost,
    )(x_bf, w1_bf, b1_f, w2_bf, b2_f, w3_bf, b3_f)

    return out_pad[:, :nclass] if nclass_pad != nclass else out_pad


def _ref_forward(x, params, alpha):
    """Pure-JAX f32 reference (inference-mode dropout = identity)."""
    h = x @ params["w1"] + params["b1"]
    h = jnp.where(h > 0, h, alpha * h)
    h = h @ params["w2"] + params["b2"]
    h = jnp.where(h > 0, h, alpha * h)
    logits = h @ params["w3"] + params["b3"]
    return jax.nn.log_softmax(logits, axis=1)


if __name__ == "__main__":
    # Small shapes consistent with the module: N rows, nfeat -> outfeat -> outd_1 -> nclass.
    N, nfeat, outfeat, outd_1, nclass = 16, 32, 64, 32, 8
    alpha = 0.2

    key = jax.random.PRNGKey(0)
    ks = jax.random.split(key, 8)

    x = jax.random.normal(ks[0], (N, nfeat), dtype=jnp.float32)
    adj = (jax.random.uniform(ks[1], (N, N)) > 0.5).astype(jnp.float32)  # unused by forward

    def lin_init(kw, kb, fin, fout):
        bound = 1.0 / (fin ** 0.5)
        W = jax.random.uniform(kw, (fin, fout), minval=-bound, maxval=bound, dtype=jnp.float32)
        b = jax.random.uniform(kb, (1, fout), minval=-bound, maxval=bound, dtype=jnp.float32)
        return W, b

    w1, b1 = lin_init(ks[2], ks[3], nfeat, outfeat)
    w2, b2 = lin_init(ks[4], ks[5], outfeat, outd_1)
    w3, b3 = lin_init(ks[6], ks[7], outd_1, nclass)
    params = {"w1": w1, "b1": b1, "w2": w2, "b2": b2, "w3": w3, "b3": b3}

    out = jax.jit(functools.partial(mlp_forward, alpha=alpha))(x, adj, params)
    out = jax.block_until_ready(out)

    assert out.shape == (N, nclass), out.shape
    # log_softmax sanity: each row's exp sums to 1 (normalization is exact f32).
    assert jnp.allclose(jnp.exp(out).sum(axis=1), 1.0, atol=1e-4)
    # f32 reference check (lenient tolerance: bf16 MXU operands).
    ref = _ref_forward(x, params, alpha)
    max_err = float(jnp.max(jnp.abs(out - ref)))
    assert max_err < 0.1, f"max abs err vs f32 reference = {max_err}"
    print("KERNEL_OK")
</pallas_src>

<mosaic_0001>
module attributes {stable_mosaic.version = 11 : i64} {
  func.func @_mlp_kernel(%arg0: i32, %arg1: memref<8x32xbf16, #tpu.memory_space<vmem>>, %arg2: memref<32x64xbf16, #tpu.memory_space<vmem>>, %arg3: memref<1x64xf32, #tpu.memory_space<vmem>>, %arg4: memref<64x32xbf16, #tpu.memory_space<vmem>>, %arg5: memref<1x32xf32, #tpu.memory_space<vmem>>, %arg6: memref<32x128xbf16, #tpu.memory_space<vmem>>, %arg7: memref<1x128xf32, #tpu.memory_space<vmem>>, %arg8: memref<8x128xf32, #tpu.memory_space<vmem>>) attributes {dimension_semantics = [#tpu.dimension_semantics<parallel>], iteration_bounds = array<i64: 2>, scalar_prefetch = 0 : i64, scratch_operands = 0 : i64, tpu.core_type = #tpu.core_type<tc>, window_params = [{transform_indices = @transform_0, window_bounds = array<i64: 8, 32>}, {pipeline_mode = #tpu.pipeline_mode<synchronous>, transform_indices = @transform_1, window_bounds = array<i64: 32, 64>}, {pipeline_mode = #tpu.pipeline_mode<synchronous>, transform_indices = @transform_2, window_bounds = array<i64: 1, 64>}, {pipeline_mode = #tpu.pipeline_mode<synchronous>, transform_indices = @transform_3, window_bounds = array<i64: 64, 32>}, {pipeline_mode = #tpu.pipeline_mode<synchronous>, transform_indices = @transform_4, window_bounds = array<i64: 1, 32>}, {pipeline_mode = #tpu.pipeline_mode<synchronous>, transform_indices = @transform_5, window_bounds = array<i64: 32, 128>}, {pipeline_mode = #tpu.pipeline_mode<synchronous>, transform_indices = @transform_6, window_bounds = array<i64: 1, 128>}, {transform_indices = @transform_7, window_bounds = array<i64: 8, 128>}]} {
    %c0 = arith.constant 0 : index
    %c0_0 = arith.constant 0 : index
    %0 = vector.load %arg1[%c0, %c0_0] : memref<8x32xbf16, #tpu.memory_space<vmem>>, vector<8x32xbf16>
    %c0_1 = arith.constant 0 : index
    %c0_2 = arith.constant 0 : index
    %1 = vector.load %arg2[%c0_1, %c0_2] : memref<32x64xbf16, #tpu.memory_space<vmem>>, vector<32x64xbf16>
    %cst = arith.constant dense<0.000000e+00> : vector<8x64xf32>
    %2 = tpu.matmul %0, %1, %cst {dimension_numbers = #tpu.dot_dimension_numbers<[1], [0], [0], [1], [0, 0, 1, 1], [], []>} : vector<8x32xbf16>, vector<32x64xbf16>, vector<8x64xf32> -> vector<8x64xf32>
    %c0_3 = arith.constant 0 : index
    %c0_4 = arith.constant 0 : index
    %3 = vector.load %arg3[%c0_3, %c0_4] : memref<1x64xf32, #tpu.memory_space<vmem>>, vector<1x64xf32>
    %4 = vector.broadcast %3 : vector<1x64xf32> to vector<8x64xf32>
    %5 = arith.addf %2, %4 : vector<8x64xf32>
    %cst_5 = arith.constant 2.000000e-01 : f32
    %6 = vector.broadcast %cst_5 : f32 to vector<8x64xf32>
    %7 = arith.mulf %6, %5 : vector<8x64xf32>
    %8 = arith.maximumf %5, %7 : vector<8x64xf32>
    %9 = arith.truncf %8 : vector<8x64xf32> to vector<8x64xbf16>
    %c0_6 = arith.constant 0 : index
    %c0_7 = arith.constant 0 : index
    %10 = vector.load %arg4[%c0_6, %c0_7] : memref<64x32xbf16, #tpu.memory_space<vmem>>, vector<64x32xbf16>
    %cst_8 = arith.constant dense<0.000000e+00> : vector<8x32xf32>
    %11 = tpu.matmul %9, %10, %cst_8 {dimension_numbers = #tpu.dot_dimension_numbers<[1], [0], [0], [1], [0, 0, 1, 1], [], []>} : vector<8x64xbf16>, vector<64x32xbf16>, vector<8x32xf32> -> vector<8x32xf32>
    %c0_9 = arith.constant 0 : index
    %c0_10 = arith.constant 0 : index
    %12 = vector.load %arg5[%c0_9, %c0_10] : memref<1x32xf32, #tpu.memory_space<vmem>>, vector<1x32xf32>
    %13 = vector.broadcast %12 : vector<1x32xf32> to vector<8x32xf32>
    %14 = arith.addf %11, %13 : vector<8x32xf32>
    %cst_11 = arith.constant 2.000000e-01 : f32
    %15 = vector.broadcast %cst_11 : f32 to vector<8x32xf32>
    %16 = arith.mulf %15, %14 : vector<8x32xf32>
    %17 = arith.maximumf %14, %16 : vector<8x32xf32>
    %18 = arith.truncf %17 : vector<8x32xf32> to vector<8x32xbf16>
    %c0_12 = arith.constant 0 : index
    %c0_13 = arith.constant 0 : index
    %19 = vector.load %arg6[%c0_12, %c0_13] : memref<32x128xbf16, #tpu.memory_space<vmem>>, vector<32x128xbf16>
    %cst_14 = arith.constant dense<0.000000e+00> : vector<8x128xf32>
    %20 = tpu.matmul %18, %19, %cst_14 {dimension_numbers = #tpu.dot_dimension_numbers<[1], [0], [0], [1], [0, 0, 1, 1], [], []>} : vector<8x32xbf16>, vector<32x128xbf16>, vector<8x128xf32> -> vector<8x128xf32>
    %c0_15 = arith.constant 0 : index
    %c0_16 = arith.constant 0 : index
    %21 = vector.load %arg7[%c0_15, %c0_16] : memref<1x128xf32, #tpu.memory_space<vmem>>, vector<1x128xf32>
    %22 = vector.broadcast %21 : vector<1x128xf32> to vector<8x128xf32>
    %23 = arith.addf %20, %22 : vector<8x128xf32>
    %cst_17 = arith.constant dense<0xFF800000> : vector<8xf32>
    %24 = vector.multi_reduction <maximumf>, %23, %cst_17 [1] : vector<8x128xf32> to vector<8xf32>
    %25 = vector.shape_cast %24 : vector<8xf32> to vector<8x1xf32>
    %26 = vector.broadcast %25 : vector<8x1xf32> to vector<8x128xf32>
    %27 = arith.subf %23, %26 : vector<8x128xf32>
    %28 = math.exp %27 : vector<8x128xf32>
    %cst_18 = arith.constant dense<0.000000e+00> : vector<8xf32>
    %29 = vector.multi_reduction <add>, %28, %cst_18 [1] : vector<8x128xf32> to vector<8xf32>
    %30 = vector.shape_cast %29 : vector<8xf32> to vector<8x1xf32>
    %31 = math.log %30 : vector<8x1xf32>
    %32 = vector.broadcast %31 : vector<8x1xf32> to vector<8x128xf32>
    %33 = arith.subf %27, %32 : vector<8x128xf32>
    %c0_19 = arith.constant 0 : index
    %c0_20 = arith.constant 0 : index
    %34 = vector.load %arg8[%c0_19, %c0_20] : memref<8x128xf32, #tpu.memory_space<vmem>>, vector<8x128xf32>
    tpu.vector_store %arg8[%c0_19, %c0_20], %33 {strides = array<i32>} : memref<8x128xf32, #tpu.memory_space<vmem>>, vector<8x128xf32>,
    return
  }
  func.func @transform_0(%arg0: i32) -> (i32, i32) {
    %c0_i32 = arith.constant 0 : i32
    %c0_i32_0 = arith.constant 0 : i32
    return %arg0, %c0_i32 : i32, i32
  }
  func.func @transform_1(%arg0: i32) -> (i32, i32) {
    %c0_i32 = arith.constant 0 : i32
    %c0_i32_0 = arith.constant 0 : i32
    %c0_i32_1 = arith.constant 0 : i32
    return %c0_i32, %c0_i32_0 : i32, i32
  }
  func.func @transform_2(%arg0: i32) -> (i32, i32) {
    %c0_i32 = arith.constant 0 : i32
    %c0_i32_0 = arith.constant 0 : i32
    %c0_i32_1 = arith.constant 0 : i32
    return %c0_i32, %c0_i32_0 : i32, i32
  }
  func.func @transform_3(%arg0: i32) -> (i32, i32) {
    %c0_i32 = arith.constant 0 : i32
    %c0_i32_0 = arith.constant 0 : i32
    %c0_i32_1 = arith.constant 0 : i32
    return %c0_i32, %c0_i32_0 : i32, i32
  }
  func.func @transform_4(%arg0: i32) -> (i32, i32) {
    %c0_i32 = arith.constant 0 : i32
    %c0_i32_0 = arith.constant 0 : i32
    %c0_i32_1 = arith.constant 0 : i32
    return %c0_i32, %c0_i32_0 : i32, i32
  }
  func.func @transform_5(%arg0: i32) -> (i32, i32) {
    %c0_i32 = arith.constant 0 : i32
    %c0_i32_0 = arith.constant 0 : i32
    %c0_i32_1 = arith.constant 0 : i32
    return %c0_i32, %c0_i32_0 : i32, i32
  }
  func.func @transform_6(%arg0: i32) -> (i32, i32) {
    %c0_i32 = arith.constant 0 : i32
    %c0_i32_0 = arith.constant 0 : i32
    %c0_i32_1 = arith.constant 0 : i32
    return %c0_i32, %c0_i32_0 : i32, i32
  }
  func.func @transform_7(%arg0: i32) -> (i32, i32) {
    %c0_i32 = arith.constant 0 : i32
    %c0_i32_0 = arith.constant 0 : i32
    return %arg0, %c0_i32 : i32, i32
  }
}

</mosaic_0001>

<bundles_post_ra>
// kernel: mlp_forward.1
= control target key start
LH: loop header
LB: loop body
LE: loop exit
PB: predicated region body
PF: predicated region fallthrough
CT: control target
= control target key end

     0   :  { %s696_s24 = smov 0   ;;  %s755_s0 = inlined_call_operand.vmem [shape: bf16[16,32], index: 0, kind: input, shape index: {}]   ;;  %s756_s1 = inlined_call_operand.vmem [shape: bf16[32,64], index: 1, kind: input, shape index: {}]   ;;  %s757_s2 = inlined_call_operand.vmem [shape: f32[1,64], index: 2, kind: input, shape index: {}]   ;;  %s758_s3 = inlined_call_operand.vmem [shape: bf16[64,32], index: 3, kind: input, shape index: {}]   ;;  %s759_s4 = inlined_call_operand.vmem [shape: f32[1,32], index: 4, kind: input, shape index: {}]   ;;  %s760_s5 = inlined_call_operand.vmem [shape: bf16[32,128], index: 5, kind: input, shape index: {}]   ;;  %s761_s6 = inlined_call_operand.vmem [shape: f32[1,128], index: 6, kind: input, shape index: {}]   ;;  %s762_s7 = inlined_call_operand.vmem [shape: f32[16,128], index: 7, kind: output, shape index: {}]  }
   0x1 LB: > { %s562_s25 = sadd.s32 4294967295, %s652_s24   ;;  %p566_p0 = scmp.ge.s32.totalorder %s652_s24, 1  ;;  %s652_s24 = sphi %s696_s24, %s17_s24  }
   0x2   : > { %p236_p1 = scmp.lt.s32.totalorder %s652_s24, 3 }
   0x4   : > { %p237_p2 = pnand %p566_p0, %p236_p1 }
   0x5   : > { %v634_v0 = vld [vmem:[%s756_s1] sm:$0xff] (!%p237_p2)   ;;  %v654_v1 = vmov (!%p237_p2), 0.0   ;;  %v635_v2 = vld [vmem:[%s756_s1 + $0x8] sm:$0xff] (!%p237_p2)   ;;  %vm655_vm0 = vmmov (!%p237_p2), 0   ;;  %p266_p3 = scmp.lt.s32.totalorder (!%p237_p2), %s562_s25, 1  ;;  %vm299_vm1 = vcmask (!%p237_p2), 261120  }
   0x6   : > { %240 = sbr.rel (%p237_p2) target bundleno = 986 (0x3da), region = 48  ;;  %596 = vmatprep.subr.bf16.mxu0 (!%p237_p2), %v654_v1  ;;  %604 = vmatprep.subr.bf16.mxu1 (!%p237_p2), %v654_v1  ;;  %v636_v3 = vld [vmem:[%s758_s3] sm:$0xff] (!%p237_p2)   ;;  %v637_v4 = vld [vmem:[%s758_s3 + $0x8] sm:$0xff] (!%p237_p2)   ;;  %v638_v6 = vld [vmem:[%s758_s3 + $0x10] sm:$0xff] (!%p237_p2)   ;;  %vm385_vm2 = vcmask (!%p237_p2), 523264  }
   0x7   : > { %597 = vmatpush3.bf16.msra.mxu0 (!%p237_p2), %v634_v0  ;;  %600 = vmatprep.mubr.msk.bf16.mxu0 (!%p237_p2), %vm655_vm0, %v654_v1  ;;  %v639_v7 = vld [vmem:[%s758_s3 + $0x18] sm:$0xff] (!%p237_p2)   ;;  %v569_v8 = vld [vmem:[%s757_s2] ss:$0 sm:$0xff] (!%p237_p2)  ;;  %v641_v18 = vld [vmem:[%s760_s5 + $0x8] sm:$0xff] (!%p237_p2)  }
   0x8   : > { %598 = vmatprep.subr.bf16.mxu0 (!%p237_p2), %v654_v1  ;;  %612 = vmatprep.mubr.msk.bf16.mxu1 (!%p237_p2), %vm655_vm0, %v654_v1  ;;  %v640_v17 = vld [vmem:[%s760_s5] sm:$0xff] (!%p237_p2)  }
   0x9   : > { %605 = vmatpush3.bf16.msra.mxu1 (!%p237_p2), %v636_v3  ;;  %v573_v19 = vld [vmem:[%s759_s4] ss:$0 sm:$0xff] (!%p237_p2) }
   0xa   : > { %606 = vmatprep.subr.bf16.mxu1 (!%p237_p2), %v654_v1  ;;  %v579_v28 = vld [vmem:[%s761_s6] ss:$0 sm:$0xff] (!%p237_p2) }
   0xb   : > { %599 = vmatpush3.bf16.msra.mxu0 (!%p237_p2), %v635_v2 }
   0xc   : > { %616 = vmatprep.subr.bf16.mxu0 (!%p237_p2), %v654_v1 }
   0xd   : > { %s764_s25 = smov (!%p266_p3, %s562_s25), 1  ;;  %607 = vmatpush3.bf16.msra.mxu1 %v637_v4 }
   0xe   : > { %s567_s11 = sshll.u32 %s764_s25, 2  ;;  %608 = vmatprep.subr.bf16.mxu1 %v654_v1  ;;  %s568_s8 = sshll.u32 %s764_s25, 3 }
   0xf   : > { %s269_s14 = scalar_lea.vmem %s755_s0, %s567_s11  ;;  %s273_s11 = scalar_lea.vmem %s762_s7, %s568_s8 }
  0x10   : > { %v275_v5 = vld [vmem:[%s269_s14] sm:$0xf] }
  0x11   : > { %601 = vmatmul.mubr.msk.bf16.vlgmr.msra.gmra.mrb[0].mxu0 %vm299_vm1, %v275_v5  ;;  %609 = vmatpush3.bf16.msra.mxu1 %v638_v6 }
  0x12   : > { %620 = vmatprep.mubr.msk.bf16.mxu0 %vm655_vm0, %v654_v1  ;;  %610 = vmatprep.subr.bf16.mxu1 %v654_v1 }
  0x13   : > { %617 = vmatpush3.bf16.msra.mxu0 %v640_v17 }
  0x14   : > { %618 = vmatprep.subr.bf16.mxu0 %v654_v1 }
  0x15   : > { %611 = vmatpush3.bf16.msra.mxu1 %v639_v7 }
  0x17   : > { %619 = vmatpush3.bf16.msra.mxu0 %v641_v18 }
  0xe4   : > { %v337_v9 = vpop.f32.mrb[0].mxu0 }
  0xe5   : > { %v338_v10 = vadd.f32 %v569_v8, %v337_v9  ;;  %v602_v11 = vpop.f32.mrb[1].mxu0 }
  0xe6   : > { %v340_v12 = vpop.f32.mrb[2].mxu0 }
  0xe7   : > { %v343_v13 = vmul.f32 0.2, %v338_v10  ;;  %v603_v14 = vpop.f32.mrb[3].mxu0 }
  0xe9   : > { %v344_v15 = vmax.f32 %v338_v10, %v343_v13 }
  0xeb   : > { %v345_v16 = vpack.c.bf16 %v344_v15, %v344_v15 }
  0xed   : > { %613 = vmatmul.mubr.msk.bf16.vlgmr.msra.gmra.mrb[0].mxu1 %vm385_vm2, %v345_v16 }
 0x1c0   : > { %v423_v20 = vpop.f32.mrb[0].mxu1 }
 0x1c1   : > { %v424_v21 = vadd.f32 %v573_v19, %v423_v20  ;;  %v614_v22 = vpop.f32.mrb[1].mxu1 }
 0x1c2   : > { %v426_v23 = vpop.f32.mrb[2].mxu1 }
 0x1c3   : > { %v429_v24 = vmul.f32 0.2, %v424_v21  ;;  %v615_v25 = vpop.f32.mrb[3].mxu1 }
 0x1c5   : > { %v430_v26 = vmax.f32 %v424_v21, %v429_v24 }
 0x1c7   : > { %v431_v27 = vpack.c.bf16 %v430_v26, %v430_v26 }
 0x1c9   : > { %621 = vmatmul.mubr.msk.bf16.vlgmr.msra.gmra.mrb[4].mxu0 %vm299_vm1, %v431_v27 }
 0x29c   : > { %v492_v29 = vpop.f32.mrb[4].mxu0 }
 0x29d   : > { %v493_v30 = vadd.f32 %v579_v28, %v492_v29  ;;  %v622_v31 = vpop.f32.mrb[5].mxu0 }
 0x29e   : > { %v495_v32 = vpop.f32.mrb[6].mxu0 }
 0x29f   : > { %498 = vmax.xlane.f32.xlu0 %v493_v30  ;;  %v623_v33 = vpop.f32.mrb[7].mxu0 }
 0x32c   : > { %v499_v34 = vpop.xlane.xlu0 %498 }
 0x32d   : > { %v500_v35 = vsub.f32 %v493_v30, %v499_v34 }
 0x32f   : > { %v501_v36 = vmul.f32 1.442695, %v500_v35 }
 0x331   : > { %642 = vpow2.f32 %v501_v36 }
 0x33b   : > { %v643_v37 = vpop.eup %642 }
 0x33c   : > { %503 = vadd.xlane.f32.xlu0 %v643_v37 }
 0x3c9   : > { %v504_v38 = vpop.xlane.xlu0 %503 }
 0x3ca   : > { %644 = vlog2.f32 %v504_v38 }
 0x3d4   : > { %v645_v39 = vpop.eup %644 }
 0x3d5   : > { %v506_v40 = vmul.f32 0.6931472, %v645_v39 }
 0x3d7   : > { %v507_v41 = vsub.f32 %v500_v35, %v506_v40 }
 0x3d9   : > { %508 = vst [vmem:[%s273_s11] sm:$0xff] %v507_v41 }
 0x3da PF: > { %s17_s24 = sadd.s32 1, %s652_s24  }
 0x3db   : > { %p14_p4 = scmp.ge.s32.totalorder %s17_s24, 4  }
 0x3dd   :  { %16 = sbr.rel (!%p14_p4) target bundleno = 1 (0x1), region = 78 }

</bundles_post_ra>
